<compile_context>
chip_gen: v6e
topology: v6e:2x2x1
jax: 0.10.0
libtpu: 0.0.40
codegen_flags: <defaults>
</compile_context>

<pallas_src>
import functools

import jax
import jax.numpy as jnp
from jax.experimental import pallas as pl
from jax.experimental.pallas import tpu as pltpu


def _round_up(v, m):
    return (v + m - 1) // m * m


def _gated_attn_kernel(x_ref, wab_ref, bab_ref, wc_ref, bc_ref, out_ref):
    Dp = wc_ref.shape[0]
    cdt = wab_ref.dtype  # compute dtype (f32 or bf16)

    x = x_ref[...]  # already in compute dtype

    # Fused first layer: one wide matmul covering both the a- and b-branch,
    # accumulated in f32 on the MXU.
    h = (jnp.dot(x, wab_ref[...], preferred_element_type=jnp.float32)
         + bab_ref[...].astype(jnp.float32))

    # tanh/sigmoid/gate: bf16 on the bf16 compute path (bf16 EUP on v6e/v7x),
    # f32 otherwise.
    gate_dtype = cdt if cdt == jnp.bfloat16 else jnp.float32
    h = h.astype(gate_dtype)
    a = jnp.tanh(h[:, :Dp])            # attention_a: Linear -> Tanh
    b = jax.nn.sigmoid(h[:, Dp:])      # attention_b: Linear -> Sigmoid
    g = (a * b).astype(cdt)            # gated product

    # attention_c: Linear(D, n_classes) into a lane-dense (padded) block.
    out = (jnp.dot(g, wc_ref[...], preferred_element_type=jnp.float32)
           + bc_ref[...].astype(jnp.float32))
    out_ref[...] = out.astype(out_ref.dtype)


def prepare_params(wa, ba, wb, bb, wc, bc, compute_dtype=None):
    """One-time weight fusion / padding, hoisted out of the per-call path.

    Returns (wab, bab, wc_p, bc_p) with:
      wab  : (L, 2*Dp)  = [Wa | Wb], each branch padded to Dp = round_up(D,128)
      bab  : (1, 2*Dp)  = [ba | bb], padded
      wc_p : (Dp, Cp)   Cp = round_up(n_classes, 128)
      bc_p : (1, Cp)
    Padding columns of the a-branch give tanh(0)=0, so padded gate columns
    are exactly 0 and padded wc rows contribute nothing (correctness holds).
    """
    L, D = wa.shape
    C = wc.shape[1]
    if compute_dtype is None:
        compute_dtype = wa.dtype
    Dp = _round_up(D, 128)
    Cp = _round_up(max(C, 1), 128)

    wa_p = jnp.pad(wa, ((0, 0), (0, Dp - D)))
    wb_p = jnp.pad(wb, ((0, 0), (0, Dp - D)))
    ba_p = jnp.pad(ba, ((0, 0), (0, Dp - D)))
    bb_p = jnp.pad(bb, ((0, 0), (0, Dp - D)))

    wab = jnp.concatenate([wa_p, wb_p], axis=1).astype(compute_dtype)
    bab = jnp.concatenate([ba_p, bb_p], axis=1).astype(compute_dtype)
    wc_p = jnp.pad(wc, ((0, Dp - D), (0, Cp - C))).astype(compute_dtype)
    bc_p = jnp.pad(bc, ((0, 0), (0, Cp - C))).astype(compute_dtype)
    return wab, bab, wc_p, bc_p


@functools.partial(jax.jit, static_argnames=("n_classes", "tile_n"))
def attn_net_gated(x, wab, bab, wc_p, bc_p, *, n_classes, tile_n=512):
    """Pallas forward pass. Returns (A, x) exactly like the PyTorch module.

    x     : (N, L), ideally already in the same dtype as the prepared params
            (bf16 recommended) so no extra HBM cast pass is needed.
    tile_n: rows per grid step (multiple of 8 for f32, 16 for bf16).  512-1024
            with bf16 is safe on all of v5e/v6e/v7x; keep >= 2 grid steps so
            megacore sharding gives both v7x TensorCores work.
    """
    N, L = x.shape
    Dp2 = wab.shape[1]
    Dp = Dp2 // 2
    Cp = wc_p.shape[1]
    cdt = wab.dtype

    # dtype-aware sublane packing: f32 -> 8, bf16 -> 16, int8 -> 32 rows.
    packing = max(1, 4 // jnp.dtype(cdt).itemsize)
    tile_n = min(tile_n, _round_up(N, 8 * packing))
    assert tile_n % (8 * packing) == 0, (tile_n, cdt)

    # Callers should pass x in the compute dtype; this cast is a fallback.
    x_c = x if x.dtype == cdt else x.astype(cdt)

    grid = (pl.cdiv(N, tile_n),)
    out_dtype = jnp.float32  # keep attention logits in f32 regardless of cdt

    # VMEM budget: double-buffered x/out tiles + single-buffered weights +
    # f32 intermediates; generous headroom, capped at 64 MiB (v7x per-TC).
    isz = jnp.dtype(cdt).itemsize
    vmem_needed = (2 * tile_n * L * isz                     # x tile x2
                   + 2 * tile_n * Cp * 4                    # out tile x2 (f32)
                   + (L * Dp2 + Dp2 + Dp * Cp + Cp) * isz   # weights, 1 buffer
                   + tile_n * Dp2 * 4 + tile_n * Cp * 4)    # f32 temps
    vmem_limit = int(min(max(2 * vmem_needed, 32 << 20), 64 << 20))

    def _wspec(shape):
        # Constant-index weight/bias blocks: fetched once, single-buffered.
        kwargs = {}
        if hasattr(pl, "Buffered"):
            kwargs["pipeline_mode"] = pl.Buffered(1)
        return pl.BlockSpec(shape, lambda i: (0, 0), **kwargs)

    A_p = pl.pallas_call(
        _gated_attn_kernel,
        out_shape=jax.ShapeDtypeStruct((N, Cp), out_dtype),
        grid_spec=pltpu.PrefetchScalarGridSpec(
            num_scalar_prefetch=0,
            grid=grid,
            in_specs=[
                pl.BlockSpec((tile_n, L), lambda i: (i, 0)),   # x row tile
                _wspec((L, Dp2)),                              # [Wa | Wb]
                _wspec((1, Dp2)),                              # [ba | bb]
                _wspec((Dp, Cp)),                              # Wc (padded)
                _wspec((1, Cp)),                               # bc (padded)
            ],
            out_specs=pl.BlockSpec((tile_n, Cp), lambda i: (i, 0)),
        ),
        compiler_params=pltpu.CompilerParams(
            dimension_semantics=("parallel",),
            vmem_limit_bytes=vmem_limit),
    )(x_c, wab, bab, wc_p, bc_p)

    # TODO(synk): fuse the downstream softmax-over-N / A^T @ x consumer to
    # avoid this extra pass over the padded output.
    A = A_p[:, :n_classes]
    return A, x


def init_params(key, L, D, n_classes, dtype=jnp.float32):
    """Deterministic PyTorch-Linear-style init (uniform +/- 1/sqrt(fan_in))."""
    ks = jax.random.split(key, 6)
    bound_a = 1.0 / (L ** 0.5)
    bound_c = 1.0 / (D ** 0.5)
    wa = jax.random.uniform(ks[0], (L, D), dtype, -bound_a, bound_a)
    ba = jax.random.uniform(ks[1], (1, D), dtype, -bound_a, bound_a)
    wb = jax.random.uniform(ks[2], (L, D), dtype, -bound_a, bound_a)
    bb = jax.random.uniform(ks[3], (1, D), dtype, -bound_a, bound_a)
    wc = jax.random.uniform(ks[4], (D, n_classes), dtype, -bound_c, bound_c)
    bc = jax.random.uniform(ks[5], (1, n_classes), dtype, -bound_c, bound_c)
    return wa, ba, wb, bb, wc, bc


def reference(x, wa, ba, wb, bb, wc, bc):
    a = jnp.tanh(x @ wa + ba)
    b = jax.nn.sigmoid(x @ wb + bb)
    return (a * b) @ wc + bc


if __name__ == "__main__":
    # Small shapes; N not a tile multiple (partial last block) and D not a
    # multiple of 128 (exercises the Dp padding path).
    N, L, D, n_classes = 300, 128, 96, 1
    key = jax.random.PRNGKey(0)
    kx, kp = jax.random.split(key)
    x = jax.random.normal(kx, (N, L), jnp.float32)
    params = init_params(kp, L, D, n_classes)
    A_ref = reference(x, *params)

    # f32 compute path (tight tolerance vs reference).
    prep32 = prepare_params(*params, compute_dtype=jnp.float32)
    A32, x_out = attn_net_gated(x, *prep32, n_classes=n_classes, tile_n=128)
    jax.block_until_ready((A32, x_out))
    assert A32.shape == (N, n_classes)
    assert A32.dtype == jnp.float32
    assert x_out.shape == x.shape
    assert jnp.allclose(A32, A_ref, atol=2e-5, rtol=2e-5)
    assert jnp.array_equal(x_out, x)

    # bf16 compute path (MXU fast path + halved HBM stream), f32 logits out.
    prep16 = prepare_params(*params, compute_dtype=jnp.bfloat16)
    x16 = x.astype(jnp.bfloat16)
    A16, _ = attn_net_gated(x16, *prep16, n_classes=n_classes, tile_n=128)
    jax.block_until_ready(A16)
    assert A16.shape == (N, n_classes)
    assert A16.dtype == jnp.float32
    assert jnp.allclose(A16, A_ref, atol=8e-2, rtol=8e-2)

    print("KERNEL_OK")
</pallas_src>

<mosaic_0001>
module attributes {stable_mosaic.version = 11 : i64} {
  func.func @_gated_attn_kernel(%arg0: i32, %arg1: memref<128x128xf32, #tpu.memory_space<vmem>>, %arg2: memref<128x256xf32, #tpu.memory_space<vmem>>, %arg3: memref<1x256xf32, #tpu.memory_space<vmem>>, %arg4: memref<128x128xf32, #tpu.memory_space<vmem>>, %arg5: memref<1x128xf32, #tpu.memory_space<vmem>>, %arg6: memref<128x128xf32, #tpu.memory_space<vmem>>) attributes {dimension_semantics = [#tpu.dimension_semantics<parallel>], iteration_bounds = array<i64: 3>, scalar_prefetch = 0 : i64, scratch_operands = 0 : i64, tpu.core_type = #tpu.core_type<tc>, window_params = [{transform_indices = @transform_0, window_bounds = array<i64: 128, 128>}, {pipeline_mode = #tpu.pipeline_mode<synchronous>, transform_indices = @transform_1, window_bounds = array<i64: 128, 256>}, {pipeline_mode = #tpu.pipeline_mode<synchronous>, transform_indices = @transform_2, window_bounds = array<i64: 1, 256>}, {pipeline_mode = #tpu.pipeline_mode<synchronous>, transform_indices = @transform_3, window_bounds = array<i64: 128, 128>}, {pipeline_mode = #tpu.pipeline_mode<synchronous>, transform_indices = @transform_4, window_bounds = array<i64: 1, 128>}, {transform_indices = @transform_5, window_bounds = array<i64: 128, 128>}]} {
    %c0 = arith.constant 0 : index
    %c0_0 = arith.constant 0 : index
    %0 = vector.load %arg1[%c0, %c0_0] : memref<128x128xf32, #tpu.memory_space<vmem>>, vector<128x128xf32>
    %c0_1 = arith.constant 0 : index
    %c0_2 = arith.constant 0 : index
    %1 = vector.load %arg2[%c0_1, %c0_2] : memref<128x256xf32, #tpu.memory_space<vmem>>, vector<128x256xf32>
    %cst = arith.constant dense<0.000000e+00> : vector<128x256xf32>
    %2 = tpu.matmul %0, %1, %cst {dimension_numbers = #tpu.dot_dimension_numbers<[1], [0], [0], [1], [0, 0, 1, 1], [], []>} : vector<128x128xf32>, vector<128x256xf32>, vector<128x256xf32> -> vector<128x256xf32>
    %c0_3 = arith.constant 0 : index
    %c0_4 = arith.constant 0 : index
    %3 = vector.load %arg3[%c0_3, %c0_4] : memref<1x256xf32, #tpu.memory_space<vmem>>, vector<1x256xf32>
    %4 = vector.broadcast %3 : vector<1x256xf32> to vector<128x256xf32>
    %5 = arith.addf %2, %4 : vector<128x256xf32>
    %6 = vector.extract_strided_slice %5 {offsets = [0, 0], sizes = [128, 128], strides = [1, 1]} : vector<128x256xf32> to vector<128x128xf32>
    %7 = math.tanh %6 : vector<128x128xf32>
    %8 = vector.extract_strided_slice %5 {offsets = [0, 128], sizes = [128, 128], strides = [1, 1]} : vector<128x256xf32> to vector<128x128xf32>
    %9 = arith.negf %8 : vector<128x128xf32>
    %10 = math.exp %9 : vector<128x128xf32>
    %cst_5 = arith.constant 1.000000e+00 : f32
    %11 = vector.broadcast %cst_5 : f32 to vector<128x128xf32>
    %12 = arith.addf %11, %10 : vector<128x128xf32>
    %13 = arith.divf %11, %12 : vector<128x128xf32>
    %14 = arith.mulf %7, %13 : vector<128x128xf32>
    %c0_6 = arith.constant 0 : index
    %c0_7 = arith.constant 0 : index
    %15 = vector.load %arg4[%c0_6, %c0_7] : memref<128x128xf32, #tpu.memory_space<vmem>>, vector<128x128xf32>
    %cst_8 = arith.constant dense<0.000000e+00> : vector<128x128xf32>
    %16 = tpu.matmul %14, %15, %cst_8 {dimension_numbers = #tpu.dot_dimension_numbers<[1], [0], [0], [1], [0, 0, 1, 1], [], []>} : vector<128x128xf32>, vector<128x128xf32>, vector<128x128xf32> -> vector<128x128xf32>
    %c0_9 = arith.constant 0 : index
    %c0_10 = arith.constant 0 : index
    %17 = vector.load %arg5[%c0_9, %c0_10] : memref<1x128xf32, #tpu.memory_space<vmem>>, vector<1x128xf32>
    %18 = vector.broadcast %17 : vector<1x128xf32> to vector<128x128xf32>
    %19 = arith.addf %16, %18 : vector<128x128xf32>
    %c0_11 = arith.constant 0 : index
    %c0_12 = arith.constant 0 : index
    %20 = vector.load %arg6[%c0_11, %c0_12] : memref<128x128xf32, #tpu.memory_space<vmem>>, vector<128x128xf32>
    tpu.vector_store %arg6[%c0_11, %c0_12], %19 {strides = array<i32>} : memref<128x128xf32, #tpu.memory_space<vmem>>, vector<128x128xf32>,
    return
  }
  func.func @transform_0(%arg0: i32) -> (i32, i32) {
    %c0_i32 = arith.constant 0 : i32
    %c0_i32_0 = arith.constant 0 : i32
    return %arg0, %c0_i32 : i32, i32
  }
  func.func @transform_1(%arg0: i32) -> (i32, i32) {
    %c0_i32 = arith.constant 0 : i32
    %c0_i32_0 = arith.constant 0 : i32
    %c0_i32_1 = arith.constant 0 : i32
    return %c0_i32, %c0_i32_0 : i32, i32
  }
  func.func @transform_2(%arg0: i32) -> (i32, i32) {
    %c0_i32 = arith.constant 0 : i32
    %c0_i32_0 = arith.constant 0 : i32
    %c0_i32_1 = arith.constant 0 : i32
    return %c0_i32, %c0_i32_0 : i32, i32
  }
  func.func @transform_3(%arg0: i32) -> (i32, i32) {
    %c0_i32 = arith.constant 0 : i32
    %c0_i32_0 = arith.constant 0 : i32
    %c0_i32_1 = arith.constant 0 : i32
    return %c0_i32, %c0_i32_0 : i32, i32
  }
  func.func @transform_4(%arg0: i32) -> (i32, i32) {
    %c0_i32 = arith.constant 0 : i32
    %c0_i32_0 = arith.constant 0 : i32
    %c0_i32_1 = arith.constant 0 : i32
    return %c0_i32, %c0_i32_0 : i32, i32
  }
  func.func @transform_5(%arg0: i32) -> (i32, i32) {
    %c0_i32 = arith.constant 0 : i32
    %c0_i32_0 = arith.constant 0 : i32
    return %arg0, %c0_i32 : i32, i32
  }
}

</mosaic_0001>

<bundles_post_ra>
// kernel: attn_net_gated.1
= control target key start
LH: loop header
LB: loop body
LE: loop exit
PB: predicated region body
PF: predicated region fallthrough
CT: control target
= control target key end

     0   :  { %10 = vsyncpa [#allocation3], 0  ;;  %s2125_s0 = inlined_call_operand.hbm [shape: f32[300,128], index: 0, kind: input, shape index: {}]   ;;  %s2126_s1 = inlined_call_operand.hbm [shape: f32[128,256], index: 1, kind: input, shape index: {}]   ;;  %s2127_s2 = inlined_call_operand.hbm [shape: f32[1,256], index: 2, kind: input, shape index: {}]   ;;  %s2128_s3 = inlined_call_operand.hbm [shape: f32[128,128], index: 3, kind: input, shape index: {}]   ;;  %s2129_s4 = inlined_call_operand.vmem [shape: f32[1,128], index: 4, kind: input, shape index: {}]   ;;  %s2130_s5 = inlined_call_operand.vmem [shape: f32[300,128], index: 5, kind: output, shape index: {}]  }
   0x1   :  { %12 = vsyncpa [#allocation3 + $0x1], 0 }
   0x2   :  { %13 = vsyncpa [#allocation5], 0 }
   0x3   :  { %14 = vsyncpa [#allocation8], 0  ;;  %s1775_s18 = smov 0   ;;  %s1777_s19 = smov 0  }
   0x4   :  { %s1779_s20 = smov 0   ;;  %s1781_s21 = smov 0  }
   0x5 LB: > { %s1794_s22 = sadd.s32 4294967295, %s1700_s21   ;;  %s1797_s23 = sadd.s32 1, %s1700_s21   ;;  %s1700_s21 = sphi %s1781_s21, %s2152_s21   ;;  %s1696_s20 = sphi %s1779_s20, %s2151_s20   ;;  %s1692_s19 = sphi %s1777_s19, %s2150_s19   ;;  %s1688_s18 = sphi %s1775_s18, %s2149_s18  }
   0x6   : > { %s24_s24 = ssub.s32 %s1700_s21, %s1797_s23  ;;  %s27_s25 = sadd.s32 1, %s1696_s20 }
   0x7   : > { %p25_p0 = scmp.eq.s32.totalorder %s24_s24, 0  ;;  %p34_p1 = scmp.ne.s32.totalorder %s1696_s20, %s1692_s19 }
   0x8   : > { %p35_p2 = scmp.eq.s32.totalorder %s1700_s21, 0  ;;  %p40_p3 = scmp.ne.s32.totalorder %s1692_s19, %s1688_s18 }
   0x9   : > { %s1807_s26 = scalar_select %p25_p0, %s1696_s20, %s27_s25  }
   0xa   : > { %p1809_p4 = por %p35_p2, %p34_p1  ;;  %p2131_p5 = scmp.eq.s32.totalorder %s1794_s22, 0 }
   0xb   : > { %p148_p6 = scmp.eq.s32.totalorder %s1794_s22, 2  ;;  %p1147_p7 = scmp.ge.s32.totalorder %s1700_s21, 1 }
   0xc   : > { %p1818_p8 = por %p2131_p5, %p40_p3  ;;  %p161_p9 = scmp.lt.s32.totalorder %s1700_s21, 4 }
   0xd   : > { %p1823_p10 = por %p148_p6, %p34_p1  ;;  %s1734_s6 = smov [#allocation4]  }
   0xe   : > { %s2135_s28 = scalar_select %p1818_p8, 1, 0 }
   0xf   : > { %s2136_s29 = scalar_select %p1823_p10, 1, 0 }
  0x10   : > { %p1827_p11 = pnand %p1147_p7, %p161_p9  ;;  %s173_s7 = sshll.u32 %s1734_s6, 4  ;;  %s174_s7 = int_to_ptr.vmem [resolvable:$true] %s173_s7 }
  0x11   : > { %s1735_s9 = smov [#allocation6]   ;;  %s1736_s11 = smov [#allocation7]  }
  0x12   : > { %s2137_s30 = scalar_select %p1827_p11, 1, 0 }
  0x13   : > { %p1304_p12 = pneg %p1827_p11  ;;  %s187_s10 = sshll.u32 %s1735_s9, 4  ;;  %s188_s10 = int_to_ptr.vmem [resolvable:$true] %s187_s10 }
  0x14   : > { %s197_s12 = sshll.u32 %s1736_s11, 4  ;;  %s1533_s13 = scalar_lea.vmem %s174_s7, 4096  ;;  %s198_s12 = int_to_ptr.vmem [resolvable:$true] %s197_s12 }
  0x15   : > { %p1835_p13 = pnand %p1304_p12, %p2131_p5  ;;  %p1534_p1 = scmp.ne.s32.totalorder %s174_s7, %s1533_s13 }
  0x16   : > { %p1541_p6 = scmp.lt.s32.totalorder %s174_s7, %s174_s7  ;;  %p1542_p7 = scmp.lt.s32.totalorder %s1533_s13, %s1533_s13 }
  0x17   : > { %p1524_p0 = pneg %p1835_p13 }
  0x18   : > { %p1543_p9 = por %p1542_p7, %p1541_p6 }
  0x19   : > { %p1536_p2 = pnand %p1534_p1, %p1524_p0 }
  0x1b   : > { %p1537_p3 = pneg %p1536_p2 }
  0x1d   : > { %p1544_p12 = pnand %p1543_p9, %p1537_p3 }
  0x1f   : > { %1547 = shalt.err (!%p1544_p12)
}
  0x20   : > { %s1737_s14 = smov 256   ;;  %s1738_s15 = smov 16  }
  0x21   : > { %1307 = dma.hbm_to_vmem [thread:$0]  (!%p1835_p13), %s2126_s1, 4096, %s174_s7, [#allocation5], %s1737_s14, %s1737_s14, %s1738_s15  }
  0x22   : > { %s1559_s18 = scalar_lea.vmem %s188_s10, 32  ;;  %p1567_p10 = scmp.lt.s32.totalorder %s188_s10, %s188_s10 }
  0x23   : > { %p1560_p5 = scmp.ne.s32.totalorder %s188_s10, %s1559_s18  ;;  %p1568_p8 = scmp.lt.s32.totalorder %s1559_s18, %s1559_s18 }
  0x25   : > { %p1562_p1 = pnand %p1560_p5, %p1524_p0  ;;  %p1569_p6 = por %p1568_p8, %p1567_p10 }
  0x27   : > { %p1563_p2 = pneg %p1562_p1 }
  0x29   : > { %p1570_p3 = pnand %p1569_p6, %p1563_p2 }
  0x2b   : > { %1573 = shalt.err (!%p1570_p3)
}
  0x2c   : > { %1310 = dma.hbm_to_vmem [thread:$0]  (!%p1835_p13), %s2127_s2, 32, %s188_s10, [#allocation5]  }
  0x2d   : > { %s1585_s6 = scalar_lea.vmem %s198_s12, 2048  ;;  %p1593_p12 = scmp.lt.s32.totalorder %s198_s12, %s198_s12 }
  0x2e   : > { %p1586_p7 = scmp.ne.s32.totalorder %s198_s12, %s1585_s6  ;;  %p1594_p1 = scmp.lt.s32.totalorder %s1585_s6, %s1585_s6 }
  0x30   : > { %p1588_p9 = pnand %p1586_p7, %p1524_p0  ;;  %p1595_p11 = por %p1594_p1, %p1593_p12 }
  0x32   : > { %p1589_p5 = pneg %p1588_p9 }
  0x34   : > { %p1596_p8 = pnand %p1595_p11, %p1589_p5 }
  0x36   : > { %1599 = shalt.err (!%p1596_p8)
}
  0x37   : > { %s1739_s7 = smov 128   ;;  %s1740_s9 = smov 8  }
  0x38   : > { %1313 = dma.hbm_to_vmem [thread:$0]  (!%p1835_p13), %s2128_s3, 2048, %s198_s12, [#allocation8], %s1739_s7, %s1739_s7, %s1740_s9  }
  0x39   : > { %p1151_p10 = scmp.ge.s32.totalorder %s1700_s21, 3 }
  0x3b   : > { %210 = sbr.rel (%p1151_p10) target bundleno = 96 (0x60), region = 32 }
  0x40   : > { %213 = sbr.rel (!%p1809_p4) target bundleno = 96 (0x60), region = 36  ;;  %s214_s10 = sand.u32 (%p1809_p4), 1, %s1696_s20  }
  0x41   : > { %s1153_s14 = sshll.u32 (%p1809_p4), %s1700_s21, 4  ;;  %s1152_s15 = sshll.u32 (%p1809_p4), %s214_s10, 7 }
  0x42   : > { %s220_s16 = ssub.s32 (%p1809_p4), 38, %s1153_s14  ;;  %s1873_s18 = scalar_lea.sflag (%p1809_p4), [#allocation3], %s214_s10 }
  0x43   : > { %p221_p11 = scmp.lt.s32.totalorder (%p1809_p4), %s220_s16, 16  ;;  %s218_s12 = scalar_lea.vmem (%p1809_p4), [#allocation2], %s1152_s15 }
  0x45   : > { %s2154_s16 = smov (!%p221_p11, %s220_s16), 16 }
  0x46   : > { %s1870_s17 = sshll.u32 %s2154_s16, 7 }
  0x47   : > { %s225_s8 = ssub.s32 2048, %s1870_s17 }
  0x48   : > { %226 = vsyncadd %s1873_s18, %s225_s8  ;;  %p1155_p4 = scmp.ne.s32.totalorder %s1870_s17, 0  ;;  %s1199_s27 = sshll.u32 %s1700_s21, 11 }
  0x49   : > { %s1881_s6 = scalar_lea.hbm %s2125_s0, %s1199_s27  ;;  %s231_s7 = sshll.u32 %s218_s12, 4  ;;  %s1883_s7 = int_to_ptr.vmem [resolvable:$true] %s231_s7 }
  0x4a   : > { %s1600_s9 = scalar_lea.hbm %s1881_s6, %s1870_s17  ;;  %s1604_s21 = scalar_lea.hbm %s2125_s0, 4864 }
  0x4b   : > { %p1601_p13 = scmp.ne.s32.totalorder %s1881_s6, %s1600_s9  ;;  %p1605_p6 = scmp.lt.s32.totalorder %s1881_s6, %s2125_s0 }
  0x4c   : > { %p1606_p3 = scmp.lt.s32.totalorder %s1604_s21, %s1600_s9 }
  0x4d   : > { %p1602_p0 = pnand %p1601_p13, %p1155_p4 }
  0x4e   : > { %p1607_p7 = por %p1606_p3, %p1605_p6 }
  0x4f   : > { %p1603_p2 = pneg %p1602_p0 }
  0x51   : > { %p1608_p9 = pnand %p1607_p7, %p1603_p2 }
  0x53   : > { %1611 = shalt.err (!%p1608_p9)
}
  0x54   : > { %s1612_s15 = scalar_lea.vmem %s1883_s7, %s1870_s17  ;;  %s1741_s16 = smov [#allocation2]  }
  0x55   : > { %p1613_p5 = scmp.ne.s32.totalorder %s1883_s7, %s1612_s15  ;;  %s1616_s8 = sshll.u32 %s1741_s16, 4  ;;  %s1617_s8 = int_to_ptr.vmem [resolvable:$false] %s1616_s8 }
  0x56   : > { %s1618_s12 = scalar_lea.vmem %s1617_s8, 4096  ;;  %p1619_p8 = scmp.lt.s32.totalorder %s1883_s7, %s1617_s8 }
  0x57   : > { %p1614_p12 = pnand %p1613_p5, %p1155_p4  ;;  %p1620_p10 = scmp.lt.s32.totalorder %s1618_s12, %s1612_s15 }
  0x59   : > { %p1615_p1 = pneg %p1614_p12  ;;  %p1621_p11 = por %p1620_p10, %p1619_p8 }
  0x5b   : > { %p1622_p13 = pnand %p1621_p11, %p1615_p1 }
  0x5d   : > { %1625 = shalt.err (!%p1622_p13)
}
  0x5e   : > { %s1742_s27 = smov 128   ;;  %s1743_s24 = smov 8  }
  0x5f   : > { %237 = dma.hbm_to_vmem [thread:$0]  (%p1155_p4), %s1881_s6, %s1870_s17, %s1883_s7, %s1873_s18, %s1742_s27, %s1742_s27, %s1743_s24  }
  0x60 PF: > { %p2139_p0 = scmp.ne.s32.totalorder %s2137_s30, 0 }
  0x61   : > { %s245_s25 = sand.u32 (!%p2139_p0), 1, %s1692_s19   ;;  %p2140_p2 = scmp.ne.s32.totalorder (!%p2139_p0), %s2135_s28, 0 }
  0x62   : > { %243 = sbr.rel (%p2139_p0) target bundleno = 674 (0x2a2), region = 40  ;;  %s1912_s9 = sshll.u32 (!%p2139_p0), %s245_s25, 7 }
  0x63   : > { %s246_s11 = scalar_lea.sflag (!%p2139_p0), [#allocation3], %s245_s25  ;;  %s1915_s13 = scalar_lea.vmem (!%p2139_p0), [#allocation2], %s1912_s9 }
  0x67   : > { %1675 = dma.done.wait (%p2140_p2), %s246_s11, 2048  }
  0x68   : > { %1677 = vsyncadd (%p2140_p2), %s246_s11, 4294965248  ;;  %p2141_p4 = scmp.eq.s32.totalorder %s1794_s22, 0 }
  0x6a   : > { %1679 = dma.done.wait (%p2141_p4), [#allocation5], 4128   ;;  %p2142_p6 = pmov %p2141_p4 }
  0x6b   : > { %p2143_p3 = pmov %p2141_p4 }
  0x6c   : > { %1681 = vsyncadd (%p2142_p6), [#allocation5], 4294963168 }
  0x6d   : > { %1683 = dma.done.wait (%p2143_p3), [#allocation8], 2048   ;;  %p2144_p7 = pmov %p2143_p3 }
  0x6e   : > { %v1744_v0 = vmov 0.0   ;;  %v344_v1 = vld [vmem:[#allocation4 + $0xf8] sm:$0xff]  ;;  %v343_v2 = vld [vmem:[#allocation4 + $0xf0] sm:$0xff]  ;;  %v342_v3 = vld [vmem:[#allocation4 + $0xe8] sm:$0xff]  ;;  %s2004_s17 = scalar_lea.vmem [#allocation9], %s1912_s9   ;;  %p2145_p9 = scmp.ne.s32.totalorder %s2136_s29, 0 }
  0x6f   : > { %1685 = vsyncadd (%p2144_p7), [#allocation8], 4294965248  ;;  %421 = vmatprep.mubr.f32.mxu0 %v1744_v0  ;;  %357 = vmatprep.subr.mxu0 %v344_v1  ;;  %v341_v4 = vld [vmem:[#allocation4 + $0xe0] sm:$0xff]  ;;  %v340_v5 = vld [vmem:[#allocation4 + $0xd8] sm:$0xff]  ;;  %v347_v1 = vlaneseq  ;;  %s1183_s18 = sshll.u32 (%p2145_p9), %s1794_s22, 4  ;;  %s1200_s6 = sshll.u32 (%p2145_p9), %s1794_s22, 7 }
  0x70   : > { %358 = vmatpush1.msra.mxu0 %v343_v2  ;;  %v339_v6 = vld [vmem:[#allocation4 + $0xd0] sm:$0xff]  ;;  %v338_v7 = vld [vmem:[#allocation4 + $0xc8] sm:$0xff]  ;;  %v337_v8 = vld [vmem:[#allocation4 + $0xc0] sm:$0xff]  ;;  %s838_s7 = ssub.s32 (%p2145_p9), 38, %s1183_s18  ;;  %s2029_s14 = scalar_lea.vmem (%p2145_p9), %s2130_s5, %s1200_s6  }
  0x71   : > { %359 = vmatprep.subr.mxu0 %v342_v3  ;;  %v336_v9 = vld [vmem:[#allocation4 + $0xb8] sm:$0xff]  ;;  %v335_v10 = vld [vmem:[#allocation4 + $0xb0] sm:$0xff]  ;;  %v334_v11 = vld [vmem:[#allocation4 + $0xa8] sm:$0xff]  ;;  %v348_v2 = vshrl.u32 %v347_v1, 7  ;;  %p839_p5 = scmp.lt.s32.totalorder (%p2145_p9), %s838_s7, 16 }
  0x72   : > { %360 = vmatpush1.msra.mxu0 %v341_v4  ;;  %v333_v12 = vld [vmem:[#allocation4 + $0xa0] sm:$0xff]  ;;  %v332_v13 = vld [vmem:[#allocation4 + $0x98] sm:$0xff]  ;;  %v331_v14 = vld [vmem:[#allocation4 + $0x90] sm:$0xff] }
  0x73   : > { %361 = vmatprep.subr.mxu0 %v340_v5  ;;  %v330_v15 = vld [vmem:[#allocation4 + $0x88] sm:$0xff]  ;;  %v329_v16 = vld [vmem:[#allocation4 + $0x80] sm:$0xff]  ;;  %v328_v17 = vld [vmem:[#allocation4 + $0x78] sm:$0xff]  ;;  %v353_v3 = vsub.s32 1, %v348_v2 }
  0x74   : > { %362 = vmatpush1.msra.mxu0 %v339_v6  ;;  %v327_v18 = vld [vmem:[#allocation4 + $0x70] sm:$0xff]  ;;  %v326_v19 = vld [vmem:[#allocation4 + $0x68] sm:$0xff]  ;;  %v325_v20 = vld [vmem:[#allocation4 + $0x60] sm:$0xff] }
  0x75   : > { %363 = vmatprep.subr.mxu0 %v338_v7  ;;  %v324_v21 = vld [vmem:[#allocation4 + $0x58] sm:$0xff]  ;;  %v323_v22 = vld [vmem:[#allocation4 + $0x50] sm:$0xff]  ;;  %v322_v23 = vld [vmem:[#allocation4 + $0x48] sm:$0xff] }
  0x76   : > { %364 = vmatpush1.msra.mxu0 %v337_v8  ;;  %v321_v24 = vld [vmem:[#allocation4 + $0x40] sm:$0xff]  ;;  %v320_v25 = vld [vmem:[#allocation4 + $0x38] sm:$0xff]  ;;  %v319_v26 = vld [vmem:[#allocation4 + $0x30] sm:$0xff] }
  0x77   : > { %365 = vmatprep.subr.mxu0 %v336_v9  ;;  %v318_v27 = vld [vmem:[#allocation4 + $0x28] sm:$0xff]  ;;  %v317_v28 = vld [vmem:[#allocation4 + $0x20] sm:$0xff]  ;;  %v316_v29 = vld [vmem:[#allocation4 + $0x18] sm:$0xff] }
  0x78   : > { %366 = vmatpush1.msra.mxu0 %v335_v10  ;;  %v315_v30 = vld [vmem:[#allocation4 + $0x10] sm:$0xff]  ;;  %v314_v31 = vld [vmem:[#allocation4 + $0x8] sm:$0xff]  ;;  %v313_v32 = vld [vmem:[#allocation4] sm:$0xff] }
  0x79   : > { %367 = vmatprep.subr.mxu0 %v334_v11  ;;  %v297_v33 = vld [vmem:[%s1915_s13] sm:$0xff]  ;;  %v298_v34 = vld [vmem:[%s1915_s13 + $0x8] sm:$0xff]  ;;  %v299_v35 = vld [vmem:[%s1915_s13 + $0x10] sm:$0xff] }
  0x7a   : > { %368 = vmatpush1.msra.mxu0 %v333_v12  ;;  %v300_v36 = vld [vmem:[%s1915_s13 + $0x18] sm:$0xff]  ;;  %v301_v37 = vld [vmem:[%s1915_s13 + $0x20] sm:$0xff]  ;;  %v302_v38 = vld [vmem:[%s1915_s13 + $0x28] sm:$0xff] }
  0x7b   : > { %369 = vmatprep.subr.mxu0 %v332_v13  ;;  %v303_v39 = vld [vmem:[%s1915_s13 + $0x30] sm:$0xff]  ;;  %v304_v40 = vld [vmem:[%s1915_s13 + $0x38] sm:$0xff]  ;;  %v305_v41 = vld [vmem:[%s1915_s13 + $0x40] sm:$0xff] }
  0x7c   : > { %370 = vmatpush1.msra.mxu0 %v331_v14  ;;  %v306_v42 = vld [vmem:[%s1915_s13 + $0x48] sm:$0xff]  ;;  %v307_v43 = vld [vmem:[%s1915_s13 + $0x50] sm:$0xff]  ;;  %v308_v44 = vld [vmem:[%s1915_s13 + $0x58] sm:$0xff] }
  0x7d   : > { %371 = vmatprep.subr.mxu0 %v330_v15  ;;  %v309_v45 = vld [vmem:[%s1915_s13 + $0x60] sm:$0xff]  ;;  %v310_v46 = vld [vmem:[%s1915_s13 + $0x68] sm:$0xff]  ;;  %v311_v47 = vld [vmem:[%s1915_s13 + $0x70] sm:$0xff]  ;;  %v349_v15 = vsub.s32 0, %v348_v2 }
  0x7e   : > { %372 = vmatpush1.msra.mxu0 %v329_v16  ;;  %v312_v48 = vld [vmem:[%s1915_s13 + $0x78] sm:$0xff]  ;;  %v659_v51 = vld [vmem:[#allocation7 + $0x68] sm:$0xff]  ;;  %v658_v52 = vld [vmem:[#allocation7 + $0x60] sm:$0xff] }
  0x7f   : > { %373 = vmatprep.subr.mxu0 %v328_v17  ;;  %v661_v49 = vld [vmem:[#allocation7 + $0x78] sm:$0xff]  ;;  %v660_v50 = vld [vmem:[#allocation7 + $0x70] sm:$0xff]  ;;  %v655_v55 = vld [vmem:[#allocation7 + $0x48] sm:$0xff] }
  0x80   : > { %374 = vmatpush1.msra.mxu0 %v327_v18  ;;  %1235 = vmatprep.subr.mxu1 %v661_v49  ;;  %v657_v53 = vld [vmem:[#allocation7 + $0x58] sm:$0xff]  ;;  %v656_v54 = vld [vmem:[#allocation7 + $0x50] sm:$0xff]  ;;  %v654_v56 = vld [vmem:[#allocation7 + $0x40] sm:$0xff] }
  0x81   : > { %375 = vmatprep.subr.mxu0 %v326_v19  ;;  %1236 = vmatpush3.msra.mxu1 %v661_v49  ;;  %v653_v57 = vld [vmem:[#allocation7 + $0x38] sm:$0xff]  ;;  %v652_v58 = vld [vmem:[#allocation7 + $0x30] sm:$0xff]  ;;  %v651_v59 = vld [vmem:[#allocation7 + $0x28] sm:$0xff] }
  0x82   : > { %376 = vmatpush1.msra.mxu0 %v325_v20  ;;  %1237 = vmatprep.subr.mxu1 %v660_v50  ;;  %v650_v60 = vld [vmem:[#allocation7 + $0x20] sm:$0xff]  ;;  %v649_v61 = vld [vmem:[#allocation7 + $0x18] sm:$0xff]  ;;  %v648_v62 = vld [vmem:[#allocation7 + $0x10] sm:$0xff] }
  0x83   : > { %377 = vmatprep.subr.mxu0 %v324_v21  ;;  %1238 = vmatpush3.msra.mxu1 %v660_v50  ;;  %v647_v63 = vld [vmem:[#allocation7 + $0x8] sm:$0xff]  ;;  %v345_v4 = vld [vmem:[#allocation6] sm:$0x3] }
  0x84   : > { %378 = vmatpush1.msra.mxu0 %v323_v22  ;;  %1239 = vmatprep.subr.mxu1 %v659_v51  ;;  %v1961_v5 = vrot.slane %v345_v4, %v353_v3  ;;  %v1966_v20 = vrot.slane %v345_v4, %v349_v15 }
  0x85   : > { %379 = vmatprep.subr.mxu0 %v322_v23  ;;  %1240 = vmatpush3.msra.mxu1 %v659_v51 }
  0x86   : > { %380 = vmatpush1.msra.mxu0 %v321_v24  ;;  %1241 = vmatprep.subr.mxu1 %v658_v52 }
  0x87   : > { %381 = vmatprep.subr.mxu0 %v320_v25  ;;  %1242 = vmatpush3.msra.mxu1 %v658_v52 }
  0x88   : > { %382 = vmatpush1.msra.mxu0 %v319_v26  ;;  %1243 = vmatprep.subr.mxu1 %v657_v53 }
  0x89   : > { %383 = vmatprep.subr.mxu0 %v318_v27  ;;  %1244 = vmatpush3.msra.mxu1 %v657_v53 }
  0x8a   : > { %384 = vmatpush1.msra.mxu0 %v317_v28  ;;  %1245 = vmatprep.subr.mxu1 %v656_v54 }
  0x8b   : > { %385 = vmatprep.subr.mxu0 %v316_v29  ;;  %1246 = vmatpush3.msra.mxu1 %v656_v54 }
  0x8c   : > { %386 = vmatpush1.msra.mxu0 %v315_v30  ;;  %1247 = vmatprep.subr.mxu1 %v655_v55 }
  0x8d   : > { %387 = vmatprep.subr.mxu0 %v314_v31  ;;  %1248 = vmatpush3.msra.mxu1 %v655_v55 }
  0x8e   : > { %388 = vmatpush1.msra.mxu0 %v313_v32  ;;  %1249 = vmatprep.subr.mxu1 %v654_v56 }
  0x8f   : > { %422 = vmatmul.mubr.f32.vlgmr.msra.gmra.mxu0 %v297_v33  ;;  %1250 = vmatpush3.msra.mxu1 %v654_v56 }
  0x90   : > { %427 = vmatprep.mubr.f32.mxu0 %v1744_v0  ;;  %1251 = vmatprep.subr.mxu1 %v653_v57 }
  0x91   : > { %1252 = vmatpush3.msra.mxu1 %v653_v57 }
  0x92   : > { %1253 = vmatprep.subr.mxu1 %v652_v58 }
  0x93   : > { %428 = vmatmul.mubr.f32.gmra.mxu0 %v298_v34  ;;  %1254 = vmatpush3.msra.mxu1 %v652_v58 }
  0x94   : > { %433 = vmatprep.mubr.f32.mxu0 %v1744_v0  ;;  %1255 = vmatprep.subr.mxu1 %v651_v59 }
  0x95   : > { %1256 = vmatpush3.msra.mxu1 %v651_v59 }
  0x96   : > { %1257 = vmatprep.subr.mxu1 %v650_v60 }
  0x97   : > { %434 = vmatmul.mubr.f32.gmra.mxu0 %v299_v35  ;;  %1258 = vmatpush3.msra.mxu1 %v650_v60 }
  0x98   : > { %439 = vmatprep.mubr.f32.mxu0 %v1744_v0  ;;  %1259 = vmatprep.subr.mxu1 %v649_v61 }
  0x99   : > { %1260 = vmatpush3.msra.mxu1 %v649_v61 }
  0x9a   : > { %1261 = vmatprep.subr.mxu1 %v648_v62 }
  0x9b   : > { %440 = vmatmul.mubr.f32.gmra.mxu0 %v300_v36  ;;  %1262 = vmatpush3.msra.mxu1 %v648_v62 }
  0x9c   : > { %445 = vmatprep.mubr.f32.mxu0 %v1744_v0  ;;  %1263 = vmatprep.subr.mxu1 %v647_v63 }
  0x9d   : > { %1264 = vmatpush3.msra.mxu1 %v647_v63 }
  0x9f   : > { %446 = vmatmul.mubr.f32.gmra.mxu0 %v301_v37 }
  0xa0   : > { %451 = vmatprep.mubr.f32.mxu0 %v1744_v0 }
  0xa3   : > { %452 = vmatmul.mubr.f32.gmra.mxu0 %v302_v38 }
  0xa4   : > { %457 = vmatprep.mubr.f32.mxu0 %v1744_v0 }
  0xa7   : > { %458 = vmatmul.mubr.f32.gmra.mxu0 %v303_v39 }
  0xa8   : > { %463 = vmatprep.mubr.f32.mxu0 %v1744_v0 }
  0xab   : > { %464 = vmatmul.mubr.f32.gmra.mxu0 %v304_v40 }
  0xac   : > { %469 = vmatprep.mubr.f32.mxu0 %v1744_v0 }
  0xaf   : > { %470 = vmatmul.mubr.f32.gmra.mxu0 %v305_v41 }
  0xb0   : > { %475 = vmatprep.mubr.f32.mxu0 %v1744_v0 }
  0xb3   : > { %476 = vmatmul.mubr.f32.gmra.mxu0 %v306_v42 }
  0xb4   : > { %481 = vmatprep.mubr.f32.mxu0 %v1744_v0 }
  0xb7   : > { %482 = vmatmul.mubr.f32.gmra.mxu0 %v307_v43 }
  0xb8   : > { %487 = vmatprep.mubr.f32.mxu0 %v1744_v0 }
  0xbb   : > { %488 = vmatmul.mubr.f32.gmra.mxu0 %v308_v44 }
  0xbc   : > { %493 = vmatprep.mubr.f32.mxu0 %v1744_v0 }
  0xbf   : > { %494 = vmatmul.mubr.f32.gmra.mxu0 %v309_v45 }
  0xc0   : > { %499 = vmatprep.mubr.f32.mxu0 %v1744_v0 }
  0xc3   : > { %500 = vmatmul.mubr.f32.gmra.mxu0 %v310_v46 }
  0xc4   : > { %505 = vmatprep.mubr.f32.mxu0 %v1744_v0 }
  0xc7   : > { %506 = vmatmul.mubr.f32.gmra.mxu0 %v311_v47 }
  0xc8   : > { %511 = vmatprep.mubr.f32.mxu0 %v1744_v0  ;;  %v646_v0 = vld [vmem:[#allocation7] sm:$0xff] }
  0xc9   : > { %1265 = vmatprep.subr.mxu1 %v646_v0 }
  0xca   : > { %1266 = vmatpush3.msra.mxu1 %v646_v0 }
  0xcb   : > { %512 = vmatmul.mubr.f32.gmra.mxu0 %v312_v48 }
 0x14f   : > { %v423_v6 = vpop.f32.mrf.mxu0 }
 0x150   : > { %v424_v25 = vadd.f32 %v423_v6, %v1966_v20 }
 0x151   : > { %v425_v7 = vpop.f32.mrf.mxu0 }
 0x152   : > { %v426_v8 = vadd.f32 %v425_v7, %v1961_v5 }
 0x153   : > { %v429_v9 = vpop.f32.mrf.mxu0 }
 0x154   : > { %v1165_v10 = vmul.f32 -1.442695, %v426_v8  ;;  %v430_v32 = vadd.f32 %v429_v9, %v1966_v20 }
 0x155   : > { %v431_v11 = vpop.f32.mrf.mxu0 }
 0x156   : > { %1426 = vpow2.f32 %v1165_v10  ;;  %v432_v12 = vadd.f32 %v431_v11, %v1961_v5 }
 0x157   : > { %v435_v13 = vpop.f32.mrf.mxu0 }
 0x158   : > { %v1166_v14 = vmul.f32 -1.442695, %v432_v12  ;;  %v436_v39 = vadd.f32 %v435_v13, %v1966_v20 }
 0x159   : > { %v437_v16 = vpop.f32.mrf.mxu0 }
 0x15a   : > { %1428 = vpow2.f32 %v1166_v14  ;;  %v438_v17 = vadd.f32 %v437_v16, %v1961_v5 }
 0x15b   : > { %v441_v18 = vpop.f32.mrf.mxu0 }
 0x15c   : > { %v1167_v19 = vmul.f32 -1.442695, %v438_v17  ;;  %v442_v46 = vadd.f32 %v441_v18, %v1966_v20 }
 0x15d   : > { %v443_v21 = vpop.f32.mrf.mxu0 }
 0x15e   : > { %1430 = vpow2.f32 %v1167_v19  ;;  %v444_v22 = vadd.f32 %v443_v21, %v1961_v5 }
 0x15f   : > { %v447_v23 = vpop.f32.mrf.mxu0 }
 0x160   : > { %v1168_v24 = vmul.f32 -1.442695, %v444_v22  ;;  %v448_v53 = vadd.f32 %v447_v23, %v1966_v20 }
 0x161   : > { %v449_v26 = vpop.f32.mrf.mxu0 }
 0x162   : > { %1432 = vpow2.f32 %v1168_v24  ;;  %v450_v27 = vadd.f32 %v449_v26, %v1961_v5 }
 0x163   : > { %v1427_v28 = vpop.eup %1426  ;;  %v453_v29 = vpop.f32.mrf.mxu0  ;;  %1434 = vtanh.f32 %v424_v25 }
 0x164   : > { %v582_v30 = vadd.f32 1.0, %v1427_v28  ;;  %v1169_v31 = vmul.f32 -1.442695, %v450_v27  ;;  %v454_v63 = vadd.f32 %v453_v29, %v1966_v20 }
 0x165   : > { %v455_v33 = vpop.f32.mrf.mxu0 }
 0x166   : > { %1436 = vrcp.f32 %v582_v30  ;;  %v456_v34 = vadd.f32 %v455_v33, %v1961_v5 }
 0x167   : > { %v1429_v35 = vpop.eup %1428  ;;  %1438 = vpow2.f32 %v1169_v31  ;;  %v459_v36 = vpop.f32.mrf.mxu0 }
 0x168   : > { %v583_v37 = vadd.f32 1.0, %v1429_v35  ;;  %v1170_v38 = vmul.f32 -1.442695, %v456_v34  ;;  %1440 = vtanh.f32 %v430_v32  ;;  %v460_v10 = vadd.f32 %v459_v36, %v1966_v20 }
 0x169   : > { %v461_v40 = vpop.f32.mrf.mxu0 }
 0x16a   : > { %1442 = vrcp.f32 %v583_v37  ;;  %v462_v41 = vadd.f32 %v461_v40, %v1961_v5 }
 0x16b   : > { %v1431_v42 = vpop.eup %1430  ;;  %1444 = vpow2.f32 %v1170_v38  ;;  %v465_v43 = vpop.f32.mrf.mxu0 }
 0x16c   : > { %v584_v44 = vadd.f32 1.0, %v1431_v42  ;;  %v1171_v45 = vmul.f32 -1.442695, %v462_v41  ;;  %1446 = vtanh.f32 %v436_v39  ;;  %v466_v21 = vadd.f32 %v465_v43, %v1966_v20 }
 0x16d   : > { %v467_v47 = vpop.f32.mrf.mxu0 }
 0x16e   : > { %1448 = vrcp.f32 %v584_v44  ;;  %v468_v48 = vadd.f32 %v467_v47, %v1961_v5 }
 0x16f   : > { %v1433_v49 = vpop.eup %1432  ;;  %1450 = vpow2.f32 %v1171_v45  ;;  %v471_v50 = vpop.f32.mrf.mxu0 }
 0x170   : > { %v585_v51 = vadd.f32 1.0, %v1433_v49  ;;  %v1172_v52 = vmul.f32 -1.442695, %v468_v48  ;;  %1452 = vtanh.f32 %v442_v46  ;;  %v1435_v55 = vpop.eup %1434  ;;  %v472_v31 = vadd.f32 %v471_v50, %v1966_v20 }
 0x171   : > { %v473_v54 = vpop.f32.mrf.mxu0 }
 0x172   : > { %1454 = vrcp.f32 %v585_v51  ;;  %v474_v56 = vadd.f32 %v473_v54, %v1961_v5 }
 0x173   : > { %v1437_v57 = vpop.eup %1436  ;;  %1456 = vpow2.f32 %v1172_v52  ;;  %v477_v58 = vpop.f32.mrf.mxu0 }
 0x174   : > { %v1439_v59 = vpop.eup %1438  ;;  %v1173_v60 = vmul.f32 -1.442695, %v474_v56  ;;  %v630_v61 = vmul.f32 %v1437_v57, %v1435_v55  ;;  %1458 = vtanh.f32 %v448_v53  ;;  %v478_v40 = vadd.f32 %v477_v58, %v1966_v20 }
 0x175   : > { %v586_v62 = vadd.f32 1.0, %v1439_v59  ;;  %v479_v0 = vpop.f32.mrf.mxu0  ;;  %v1441_v1 = vpop.eup %1440 }
 0x176   : > { %1460 = vpow2.f32 %v1173_v60  ;;  %v480_v2 = vadd.f32 %v479_v0, %v1961_v5  ;;  %1267 = vmatprep.mubr.f32.mxu1 %v630_v61 }
 0x177   : > { %v1443_v3 = vpop.eup %1442  ;;  %1462 = vrcp.f32 %v586_v62  ;;  %v483_v4 = vpop.f32.mrf.mxu0 }
 0x178   : > { %v1445_v6 = vpop.eup %1444  ;;  %v1174_v7 = vmul.f32 -1.442695, %v480_v2  ;;  %v631_v8 = vmul.f32 %v1443_v3, %v1441_v1  ;;  %1464 = vtanh.f32 %v454_v63  ;;  %v484_v50 = vadd.f32 %v483_v4, %v1966_v20 }
 0x179   : > { %v587_v9 = vadd.f32 1.0, %v1445_v6  ;;  %v485_v11 = vpop.f32.mrf.mxu0  ;;  %v1447_v12 = vpop.eup %1446 }
 0x17a   : > { %1466 = vpow2.f32 %v1174_v7  ;;  %v486_v13 = vadd.f32 %v485_v11, %v1961_v5  ;;  %1268 = vmatmul.mubr.f32.vlgmr.msra.gmra.mxu1 %v631_v8 }
 0x17b   : > { %v1449_v14 = vpop.eup %1448  ;;  %1468 = vrcp.f32 %v587_v9  ;;  %v489_v15 = vpop.f32.mrf.mxu0 }
 0x17c   : > { %v1451_v16 = vpop.eup %1450  ;;  %v1175_v17 = vmul.f32 -1.442695, %v486_v13  ;;  %v632_v18 = vmul.f32 %v1449_v14, %v1447_v12  ;;  %1470 = vtanh.f32 %v460_v10  ;;  %v490_v60 = vadd.f32 %v489_v15, %v1966_v20 }
 0x17d   : > { %v588_v19 = vadd.f32 1.0, %v1451_v16  ;;  %v491_v22 = vpop.f32.mrf.mxu0  ;;  %v1453_v23 = vpop.eup %1452 }
 0x17e   : > { %1472 = vpow2.f32 %v1175_v17  ;;  %v492_v24 = vadd.f32 %v491_v22, %v1961_v5  ;;  %1270 = vmatprep.mubr.f32.mxu1 %v632_v18 }
 0x17f   : > { %v1455_v25 = vpop.eup %1454  ;;  %1474 = vrcp.f32 %v588_v19  ;;  %v1985_v26 = vpop.f32.mrf.mxu0 }
 0x180   : > { %v1457_v27 = vpop.eup %1456  ;;  %v1176_v28 = vmul.f32 -1.442695, %v492_v24  ;;  %v633_v29 = vmul.f32 %v1455_v25, %v1453_v23  ;;  %1476 = vtanh.f32 %v466_v21  ;;  %v496_v8 = vadd.f32 %v1985_v26, %v1966_v20 }
 0x181   : > { %v589_v30 = vadd.f32 1.0, %v1457_v27  ;;  %v497_v32 = vpop.f32.mrf.mxu0  ;;  %v1459_v33 = vpop.eup %1458 }
 0x182   : > { %1478 = vpow2.f32 %v1176_v28  ;;  %v498_v34 = vadd.f32 %v497_v32, %v1961_v5  ;;  %1271 = vmatmul.mubr.f32.gmra.mxu1 %v633_v29 }
 0x183   : > { %v1461_v35 = vpop.eup %1460  ;;  %1480 = vrcp.f32 %v589_v30  ;;  %v501_v36 = vpop.f32.mrf.mxu0 }
 0x184   : > { %v1463_v37 = vpop.eup %1462  ;;  %v590_v38 = vadd.f32 1.0, %v1461_v35  ;;  %v1177_v39 = vmul.f32 -1.442695, %v498_v34  ;;  %1482 = vtanh.f32 %v472_v31  ;;  %v502_v13 = vadd.f32 %v501_v36, %v1966_v20 }
 0x185   : > { %v503_v41 = vpop.f32.mrf.mxu0  ;;  %v634_v42 = vmul.f32 %v1463_v37, %v1459_v33  ;;  %v1465_v43 = vpop.eup %1464 }
 0x186   : > { %1484 = vrcp.f32 %v590_v38  ;;  %v504_v44 = vadd.f32 %v503_v41, %v1961_v5 }
 0x187   : > { %v1467_v45 = vpop.eup %1466  ;;  %1486 = vpow2.f32 %v1177_v39  ;;  %1273 = vmatprep.mubr.f32.mxu1 %v634_v42  ;;  %v507_v46 = vpop.f32.mrf.mxu0  ;;  %v1181_v42 = vld [vmem:[%s2129_s4] ss:$0 sm:$0xff] }
 0x188   : > { %v1469_v47 = vpop.eup %1468  ;;  %v591_v48 = vadd.f32 1.0, %v1467_v45  ;;  %v1178_v49 = vmul.f32 -1.442695, %v504_v44  ;;  %1488 = vtanh.f32 %v478_v40  ;;  %v508_v19 = vadd.f32 %v507_v46, %v1966_v20 }
 0x189   : > { %v509_v51 = vpop.f32.mrf.mxu0  ;;  %v635_v52 = vmul.f32 %v1469_v47, %v1465_v43  ;;  %v1471_v53 = vpop.eup %1470 }
 0x18a   : > { %1490 = vrcp.f32 %v591_v48  ;;  %v510_v54 = vadd.f32 %v509_v51, %v1961_v5 }
 0x18b   : > { %v1473_v55 = vpop.eup %1472  ;;  %1492 = vpow2.f32 %v1178_v49  ;;  %1274 = vmatmul.mubr.f32.gmra.mxu1 %v635_v52  ;;  %v513_v56 = vpop.f32.mrf.mxu0 }
 0x18c   : > { %v1475_v57 = vpop.eup %1474  ;;  %v592_v58 = vadd.f32 1.0, %v1473_v55  ;;  %v1179_v59 = vmul.f32 -1.442695, %v510_v54  ;;  %1494 = vtanh.f32 %v484_v50  ;;  %v514_v26 = vadd.f32 %v513_v56, %v1966_v20 }
 0x18d   : > { %v515_v61 = vpop.f32.mrf.mxu0  ;;  %v636_v62 = vmul.f32 %v1475_v57, %v1471_v53  ;;  %v1477_v63 = vpop.eup %1476 }
 0x18e   : > { %1496 = vrcp.f32 %v592_v58  ;;  %v516_v0 = vadd.f32 %v515_v61, %v1961_v5 }
 0x18f   : > { %v1479_v1 = vpop.eup %1478  ;;  %1498 = vpow2.f32 %v1179_v59  ;;  %1276 = vmatprep.mubr.f32.mxu1 %v636_v62 }
 0x190   : > { %v1481_v2 = vpop.eup %1480  ;;  %v593_v3 = vadd.f32 1.0, %v1479_v1  ;;  %v1180_v4 = vmul.f32 -1.442695, %v516_v0  ;;  %1500 = vtanh.f32 %v490_v60 }
 0x191   : > { %v637_v6 = vmul.f32 %v1481_v2, %v1477_v63  ;;  %v1483_v7 = vpop.eup %1482 }
 0x192   : > { %1502 = vrcp.f32 %v593_v3 }
 0x193   : > { %v1485_v9 = vpop.eup %1484  ;;  %1504 = vpow2.f32 %v1180_v4  ;;  %1277 = vmatmul.mubr.f32.gmra.mxu1 %v637_v6 }
 0x194   : > { %v1487_v10 = vpop.eup %1486  ;;  %v638_v11 = vmul.f32 %v1485_v9, %v1483_v7  ;;  %1506 = vtanh.f32 %v496_v8 }
 0x195   : > { %v594_v12 = vadd.f32 1.0, %v1487_v10  ;;  %v1489_v5 = vpop.eup %1488 }
 0x196   : > { %1279 = vmatprep.mubr.f32.mxu1 %v638_v11 }
 0x197   : > { %v1491_v14 = vpop.eup %1490  ;;  %1508 = vrcp.f32 %v594_v12 }
 0x198   : > { %v1493_v15 = vpop.eup %1492  ;;  %v639_v16 = vmul.f32 %v1491_v14, %v1489_v5  ;;  %1510 = vtanh.f32 %v502_v13 }
 0x199   : > { %v595_v17 = vadd.f32 1.0, %v1493_v15  ;;  %v1495_v18 = vpop.eup %1494 }
 0x19a   : > { %1280 = vmatmul.mubr.f32.gmra.mxu1 %v639_v16 }
 0x19b   : > { %v1497_v21 = vpop.eup %1496  ;;  %1512 = vrcp.f32 %v595_v17 }
 0x19c   : > { %v1499_v22 = vpop.eup %1498  ;;  %v640_v23 = vmul.f32 %v1497_v21, %v1495_v18  ;;  %1514 = vtanh.f32 %v508_v19 }
 0x19d   : > { %v596_v24 = vadd.f32 1.0, %v1499_v22  ;;  %v1501_v25 = vpop.eup %1500 }
 0x19e   : > { %1282 = vmatprep.mubr.f32.mxu1 %v640_v23 }
 0x19f   : > { %v1503_v27 = vpop.eup %1502  ;;  %1516 = vrcp.f32 %v596_v24 }
 0x1a0   : > { %v1505_v28 = vpop.eup %1504  ;;  %v641_v29 = vmul.f32 %v1503_v27, %v1501_v25  ;;  %1518 = vtanh.f32 %v514_v26 }
 0x1a1   : > { %v597_v30 = vadd.f32 1.0, %v1505_v28  ;;  %v1507_v31 = vpop.eup %1506 }
 0x1a2   : > { %1283 = vmatmul.mubr.f32.gmra.mxu1 %v641_v29 }
 0x1a3   : > { %1520 = vrcp.f32 %v597_v30 }
 0x1a4   : > { %v1509_v32 = vpop.eup %1508 }
 0x1a5   : > { %v642_v33 = vmul.f32 %v1509_v32, %v1507_v31  ;;  %v1511_v34 = vpop.eup %1510 }
 0x1a7   : > { %1285 = vmatprep.mubr.f32.mxu1 %v642_v33 }
 0x1a8   : > { %v1513_v35 = vpop.eup %1512 }
 0x1a9   : > { %v643_v36 = vmul.f32 %v1513_v35, %v1511_v34  ;;  %v1515_v37 = vpop.eup %1514 }
 0x1ab   : > { %1286 = vmatmul.mubr.f32.gmra.mxu1 %v643_v36 }
 0x1ac   : > { %v1517_v20 = vpop.eup %1516 }
 0x1ad   : > { %v644_v38 = vmul.f32 %v1517_v20, %v1515_v37  ;;  %v1519_v39 = vpop.eup %1518 }
 0x1af   : > { %1288 = vmatprep.mubr.f32.mxu1 %v644_v38 }
 0x1b0   : > { %v1521_v40 = vpop.eup %1520 }
 0x1b1   : > { %v645_v41 = vmul.f32 %v1521_v40, %v1519_v39 }
 0x1b3   : > { %1289 = vmatmul.mubr.f32.gmra.mxu1 %v645_v41 }
 0x23a   : > { %v1269_v43 = vpop.f32.mrf.mxu1 }
 0x23b   : > { %v741_v44 = vadd.f32 %v1269_v43, %v1181_v42 }
 0x23c   : > { %v735_v45 = vpop.f32.mrf.mxu1 }
 0x23d   : > { %815 = vst [vmem:[%s2004_s17 + $0x8] sm:$0xff] %v741_v44  ;;  %v736_v46 = vadd.f32 %v1181_v42, %v735_v45 }
 0x23f   : > { %814 = vst [vmem:[%s2004_s17] sm:$0xff] %v736_v46 }
 0x242   : > { %v1272_v47 = vpop.f32.mrf.mxu1 }
 0x243   : > { %v751_v48 = vadd.f32 %v1272_v47, %v1181_v42 }
 0x244   : > { %v745_v49 = vpop.f32.mrf.mxu1 }
 0x245   : > { %817 = vst [vmem:[%s2004_s17 + $0x18] sm:$0xff] %v751_v48  ;;  %v746_v50 = vadd.f32 %v1181_v42, %v745_v49 }
 0x247   : > { %816 = vst [vmem:[%s2004_s17 + $0x10] sm:$0xff] %v746_v50 }
 0x24b   : > { %v1275_v51 = vpop.f32.mrf.mxu1 }
 0x24c   : > { %v761_v52 = vadd.f32 %v1275_v51, %v1181_v42 }
 0x24d   : > { %v755_v53 = vpop.f32.mrf.mxu1 }
 0x24e   : > { %819 = vst [vmem:[%s2004_s17 + $0x28] sm:$0xff] %v761_v52  ;;  %v756_v54 = vadd.f32 %v1181_v42, %v755_v53 }
 0x250   : > { %818 = vst [vmem:[%s2004_s17 + $0x20] sm:$0xff] %v756_v54 }
 0x253   : > { %v1278_v55 = vpop.f32.mrf.mxu1 }
 0x254   : > { %v771_v56 = vadd.f32 %v1278_v55, %v1181_v42 }
 0x255   : > { %v765_v57 = vpop.f32.mrf.mxu1 }
 0x256   : > { %821 = vst [vmem:[%s2004_s17 + $0x38] sm:$0xff] %v771_v56  ;;  %v766_v58 = vadd.f32 %v1181_v42, %v765_v57 }
 0x258   : > { %820 = vst [vmem:[%s2004_s17 + $0x30] sm:$0xff] %v766_v58 }
 0x25a   : > { %v1281_v59 = vpop.f32.mrf.mxu1 }
 0x25b   : > { %v781_v60 = vadd.f32 %v1281_v59, %v1181_v42 }
 0x25c   : > { %v775_v61 = vpop.f32.mrf.mxu1 }
 0x25d   : > { %823 = vst [vmem:[%s2004_s17 + $0x48] sm:$0xff] %v781_v60  ;;  %v776_v62 = vadd.f32 %v1181_v42, %v775_v61 }
 0x25f   : > { %822 = vst [vmem:[%s2004_s17 + $0x40] sm:$0xff] %v776_v62 }
 0x262   : > { %v1284_v63 = vpop.f32.mrf.mxu1 }
 0x263   : > { %v791_v0 = vadd.f32 %v1284_v63, %v1181_v42 }
 0x264   : > { %v785_v1 = vpop.f32.mrf.mxu1 }
 0x265   : > { %825 = vst [vmem:[%s2004_s17 + $0x58] sm:$0xff] %v791_v0  ;;  %v786_v2 = vadd.f32 %v1181_v42, %v785_v1 }
 0x267   : > { %824 = vst [vmem:[%s2004_s17 + $0x50] sm:$0xff] %v786_v2 }
 0x26b   : > { %v1287_v3 = vpop.f32.mrf.mxu1 }
 0x26c   : > { %v801_v4 = vadd.f32 %v1287_v3, %v1181_v42 }
 0x26d   : > { %v795_v6 = vpop.f32.mrf.mxu1 }
 0x26e   : > { %827 = vst [vmem:[%s2004_s17 + $0x68] sm:$0xff] %v801_v4  ;;  %v796_v7 = vadd.f32 %v1181_v42, %v795_v6 }
 0x270   : > { %826 = vst [vmem:[%s2004_s17 + $0x60] sm:$0xff] %v796_v7 }
 0x273   : > { %v1290_v8 = vpop.f32.mrf.mxu1 }
 0x274   : > { %v811_v9 = vadd.f32 %v1290_v8, %v1181_v42  ;;  %836 = sbr.rel (!%p2145_p9) target bundleno = 674 (0x2a2), region = 60 }
 0x275   : > { %v805_v10 = vpop.f32.mrf.mxu1 }
 0x276   : > { %829 = vst [vmem:[%s2004_s17 + $0x78] sm:$0xff] %v811_v9  ;;  %v806_v11 = vadd.f32 %v1181_v42, %v805_v10 }
 0x278   : > { %828 = vst [vmem:[%s2004_s17 + $0x70] sm:$0xff] %v806_v11 }
 0x279   : > { %s2156_s7 = smov (!%p839_p5, %s838_s7), 16 }
 0x27a   : > { %s1184_s15 = sshll.u32 %s2156_s7, 7 }
 0x27b   : > { %p1187_p12 = scmp.eq.s32.totalorder %s1184_s15, 0 }
 0x27c   : > { %s2035_s29 = sshrl.u32 (!%p1187_p12), %s2156_s7, 4 }
 0x27d   : > { %847 = sbr.rel (%p1187_p12) target bundleno = 674 (0x2a2), region = 64  ;;  %p1188_p1 = scmp.le.s32.totalorder (!%p1187_p12), %s2035_s29, 0 }
 0x282   : > { %1072 = sbr.rel (%p1188_p1) target bundleno = 657 (0x291), region = 146  ;;  %s2146_s22 = smov (!%p1188_p1), %s2029_s14 }
 0x283   : > { %s2147_s16 = smov (!%p1188_p1), %s2004_s17  ;;  %s2044_s8 = smov (!%p1188_p1), 0  }
 0x284   : > { %s2046_s12 = smov (!%p1188_p1), 0  }
 0x287 LB: >> { %v940_v12 = vld [vmem:[%s1708_s16] sm:$0xff]  ;;  %v942_v5 = vld [vmem:[%s1708_s16 + $0x8] sm:$0xff]  ;;  %v944_v13 = vld [vmem:[%s1708_s16 + $0x10] sm:$0xff]  ;;  %s972_s27 = sadd.s32 1, %s1712_s8  ;;  %s934_s12 = sadd.s32 1, %s1716_s12   ;;  %s1716_s12 = sphi %s2046_s12, %s934_s12   ;;  %s1712_s8 = sphi %s2044_s8, %s2148_s8   ;;  %s1708_s16 = sphi %s2147_s16, %s977_s16   ;;  %s1704_s22 = sphi %s2146_s22, %s978_s22  }
 0x288   : >> { %941 = vst [vmem:[%s1704_s22] sm:$0xff] %v940_v12  ;;  %943 = vst [vmem:[%s1704_s22 + $0x8] sm:$0xff] %v942_v5  ;;  %v946_v14 = vld [vmem:[%s1708_s16 + $0x18] sm:$0xff]  ;;  %v948_v15 = vld [vmem:[%s1708_s16 + $0x20] sm:$0xff]  ;;  %p973_p8 = scmp.ge.s32.totalorder %s972_s27, %s2035_s29  ;;  %p933_p10 = scmp.ge.s32.totalorder %s934_s12, %s2035_s29 }
 0x289   : >> { %945 = vst [vmem:[%s1704_s22 + $0x10] sm:$0xff] %v944_v13  ;;  %v950_v16 = vld [vmem:[%s1708_s16 + $0x28] sm:$0xff]  ;;  %947 = vst [vmem:[%s1704_s22 + $0x18] sm:$0xff] %v946_v14  ;;  %v952_v17 = vld [vmem:[%s1708_s16 + $0x30] sm:$0xff] }
 0x28a   : >> { %949 = vst [vmem:[%s1704_s22 + $0x20] sm:$0xff] %v948_v15  ;;  %951 = vst [vmem:[%s1704_s22 + $0x28] sm:$0xff] %v950_v16  ;;  %v954_v18 = vld [vmem:[%s1708_s16 + $0x38] sm:$0xff]  ;;  %v956_v19 = vld [vmem:[%s1708_s16 + $0x40] sm:$0xff]  ;;  %s2158_s27 = smov (%p973_p8, %s972_s27), 0 }
 0x28b   : >> { %953 = vst [vmem:[%s1704_s22 + $0x30] sm:$0xff] %v952_v17  ;;  %955 = vst [vmem:[%s1704_s22 + $0x38] sm:$0xff] %v954_v18  ;;  %v958_v21 = vld [vmem:[%s1708_s16 + $0x48] sm:$0xff]  ;;  %v960_v22 = vld [vmem:[%s1708_s16 + $0x50] sm:$0xff]  ;;  %s1189_s24 = sshll.u32 %s2158_s27, 7  ;;  %s2148_s8 = smov %s2158_s27 }
 0x28c   : >> { %957 = vst [vmem:[%s1704_s22 + $0x40] sm:$0xff] %v956_v19  ;;  %v962_v23 = vld [vmem:[%s1708_s16 + $0x58] sm:$0xff]  ;;  %959 = vst [vmem:[%s1704_s22 + $0x48] sm:$0xff] %v958_v21  ;;  %v964_v24 = vld [vmem:[%s1708_s16 + $0x60] sm:$0xff]  ;;  %936 = sbr.rel (!%p933_p10) target bundleno = 647 (0x287), region = 152 }
 0x28d   : >> { %961 = vst [vmem:[%s1704_s22 + $0x50] sm:$0xff] %v960_v22  ;;  %963 = vst [vmem:[%s1704_s22 + $0x58] sm:$0xff] %v962_v23  ;;  %v966_v25 = vld [vmem:[%s1708_s16 + $0x68] sm:$0xff]  ;;  %v968_v26 = vld [vmem:[%s1708_s16 + $0x70] sm:$0xff] }
 0x28e   : >> { %965 = vst [vmem:[%s1704_s22 + $0x60] sm:$0xff] %v964_v24  ;;  %967 = vst [vmem:[%s1704_s22 + $0x68] sm:$0xff] %v966_v25  ;;  %v970_v27 = vld [vmem:[%s1708_s16 + $0x78] sm:$0xff]  ;;  %s977_s16 = scalar_lea.vmem %s2004_s17, %s1189_s24 [#allocation9]  }
 0x28f   : >> { %969 = vst [vmem:[%s1704_s22 + $0x70] sm:$0xff] %v968_v26  ;;  %971 = vst [vmem:[%s1704_s22 + $0x78] sm:$0xff] %v970_v27  ;;  %s978_s22 = scalar_lea.vmem %s2029_s14, %s1189_s24  }
 0x291 PF: > { %s2104_s25 = sand.u32 15, %s2156_s7   ;;  %s1201_s9 = sshll.u32 %s2035_s29, 7 }
 0x292   : > { %s983_s11 = scalar_lea.vmem %s2004_s17, %s1201_s9 [#allocation9]   ;;  %s985_s13 = scalar_lea.vmem %s2029_s14, %s1201_s9  }
 0x293   : > { %p1194_p11 = scmp.le.s32.totalorder %s2104_s25, 0 }
 0x294   : > { %s1718_s28 = smov (!%p1194_p11), %s985_s13   ;;  %s1722_s30 = smov (!%p1194_p11), %s983_s11  }
 0x295   : > { %1086 = sbr.rel (%p1194_p11) target bundleno = 674 (0x2a2), region = 157  ;;  %s1726_s18 = smov (!%p1194_p11), 0  }
 0x296   : > { %s1730_s6 = smov (!%p1194_p11), 0  }
 0x29a LB: >> { %v995_v28 = vld [vmem:[%s1724_s30] sm:$0xff]  ;;  %s997_s7 = sadd.s32 1, %s1728_s18  ;;  %s989_s6 = sadd.s32 1, %s1732_s6   ;;  %s1732_s6 = sphi %s1730_s6, %s989_s6   ;;  %s1728_s18 = sphi %s1726_s18, %s1727_s18   ;;  %s1724_s30 = sphi %s1722_s30, %s1002_s30   ;;  %s1720_s28 = sphi %s1718_s28, %s1003_s28  }
 0x29b   : >> { %996 = vst [vmem:[%s1720_s28] sm:$0xff] %v995_v28  ;;  %p998_p13 = scmp.ge.s32.totalorder %s997_s7, %s2104_s25  ;;  %p988_p0 = scmp.ge.s32.totalorder %s989_s6, %s2104_s25 }
 0x29d   : >> { %s2160_s7 = smov (%p998_p13, %s997_s7), 0  ;;  %991 = sbr.rel (!%p988_p0) target bundleno = 666 (0x29a), region = 163 }
 0x29e   : >> { %s1195_s17 = sshll.u32 %s2160_s7, 3  ;;  %s1727_s18 = smov %s2160_s7  }
 0x29f   : >> { %s1002_s30 = scalar_lea.vmem %s983_s11, %s1195_s17 [#allocation9]   ;;  %s1003_s28 = scalar_lea.vmem %s985_s13, %s1195_s17  }
 0x2a2 PF: > { %p17_p2 = scmp.ge.s32.totalorder %s1797_s23, 5   ;;  %s2149_s18 = smov %s1692_s19 }
 0x2a3   : > { %s2150_s19 = smov %s1696_s20  ;;  %s2151_s20 = smov %s1807_s26 }
 0x2a4   : > { %s2152_s21 = smov %s1797_s23  ;;  %19 = sbr.rel (!%p17_p2) target bundleno = 5 (0x5), region = 174 }
 0x2a9   :  { %1019 = vsyncpa [#allocation3], 1 }
 0x2aa   :  { %1021 = vsyncpa [#allocation3 + $0x1], 1 }
 0x2ab   :  { %1022 = vsyncpa [#allocation5], 1 }
 0x2ac   :  { %1023 = vsyncpa [#allocation8], 1 }

</bundles_post_ra>
